<compile_context>
chip_gen: v5e
topology: v5e:2x2
jax: 0.10.0
libtpu: 0.0.40
codegen_flags: <defaults>
</compile_context>

<pallas_src>
import functools

import jax
import jax.numpy as jnp
from jax.experimental import pallas as pl
from jax.experimental.pallas import tpu as pltpu


def _kld_rows_kernel(m1_ref, m2_ref, out_ref, acc_ref, *,
                     n_rows, rows_per_tile, tiles_per_core):
    """Accumulate sum over rows of the per-(b,l) KL contribution.

    m1_ref/m2_ref: (rows_per_tile, D) tile of the flattened inputs.
    out_ref:       (1, 1, 1) per-core partial sum.
    acc_ref:       (1, 1) f32 VMEM accumulator scratch.
    """
    c = pl.program_id(0)              # per-core partial index ("parallel")
    t = pl.program_id(1)              # row-tile index ("arbitrary")

    @pl.when(t == 0)
    def _init():
        acc_ref[...] = jnp.zeros_like(acc_ref)

    x1 = m1_ref[...].astype(jnp.float32)          # (TR, D)
    x2 = m2_ref[...].astype(jnp.float32)
    feat_d = x1.shape[-1]
    inv_d = jnp.float32(1.0 / feat_d)

    # One-pass moments per row (single read of the tile).
    s1a = jnp.sum(x1, axis=-1, keepdims=True)     # (TR, 1)
    s2a = jnp.sum(x1 * x1, axis=-1, keepdims=True)
    s1b = jnp.sum(x2, axis=-1, keepdims=True)
    s2b = jnp.sum(x2 * x2, axis=-1, keepdims=True)

    mean1 = s1a * inv_d
    mean2 = s1b * inv_d
    # Unbiased variance (torch .var correction=1). D == 1 gives inf/NaN just
    # like torch would.
    dm1 = jnp.float32(feat_d - 1)
    var1 = (s2a - s1a * mean1) / dm1
    var2 = (s2b - s1b * mean2) / dm1

    mean_avg = 0.5 * (mean1 + mean2)
    var_avg = 0.5 * (var1 + var2)

    # NOTE: faithful to the torch module, this inverts the *mean* ("sigma"),
    # so any per-position mean <= 0 produces NaN/Inf exactly as torch would.
    # Exact divide (not approx rcp): the final KL is a small difference of
    # O(1)-sized terms and approximate-reciprocal error would dominate it.
    inv_avg = 1.0 / mean_avg

    # term_1: log-domain determinant (sum of logs over L happens via the row
    # accumulation below).
    t_log = 2.0 * jnp.log(mean_avg) - jnp.log(mean1) - jnp.log(mean2)
    # term_2: trace(diag(avg)^-1 diag(mean_i)).
    t_trace = mean1 * inv_avg + mean2 * inv_avg
    # term_3: (var_avg - var_i)^T diag(avg)^-1 (var_avg - var_i).
    dv1 = var_avg - var1
    dv2 = var_avg - var2
    t_quad = (dv1 * dv1 + dv2 * dv2) * inv_avg

    # Per-row contribution; the "-n1/-n2" constants are folded in as -2 per
    # row so summing the flattened rows gives sum_b kl_b directly.
    contrib = 0.25 * (t_log + t_trace + t_quad - 2.0)   # (TR, 1)

    # Mask rows that fall beyond the real (B*L) extent (partial last tile and
    # any clamped / duplicated tail tile): select keeps NaN/Inf garbage out.
    row0 = (c * tiles_per_core + t) * rows_per_tile
    rid = row0 + jax.lax.broadcasted_iota(jnp.int32, contrib.shape, 0)
    contrib = jnp.where(rid < n_rows, contrib, 0.0)

    acc_ref[...] += jnp.sum(contrib, axis=0, keepdims=True)

    @pl.when(t == pl.num_programs(1) - 1)
    def _store():
        out_ref[...] = jnp.reshape(acc_ref[...], (1, 1, 1))


def multivariate_kld1(m1, m2, reduction="mean"):
    assert m1.ndim == 3 and m2.ndim == 3, (
        "Features should have shape (bs, len, d), got " + str(m1.shape))
    assert m1.shape == m2.shape, (m1.shape, m2.shape)
    if reduction not in ("mean", "sum"):
        raise NotImplementedError(f"Reduction type not implemented: {reduction}")

    B, L, D = m1.shape
    N = B * L
    x1 = m1.reshape(N, D)
    x2 = m2.reshape(N, D)

    # Row-tile sizing: ~2 MiB per input per pipeline buffer in the input dtype
    # (2 inputs x 2 buffers + f32 upcast temps stays well under the 32 MiB
    # scoped-VMEM default, and under v7x's 64 MiB physical VMEM).
    itemsize = jnp.dtype(m1.dtype).itemsize
    tr = (2 * 1024 * 1024) // max(1, D * itemsize)
    tr = max(8, (min(tr, 1024) // 8) * 8)          # multiple of 8 sublanes
    n_ceil = -(-N // 8) * 8
    tr = min(tr, n_ceil)

    tiles_total = -(-N // tr)
    num_cores = 2 if tiles_total >= 2 else 1       # v7x: one partial per TC
    tiles_per_core = -(-tiles_total // num_cores)

    def row_map(c, t):
        blk = c * tiles_per_core + t
        # Clamp the (rare) fully-out-of-range tail tile onto the last valid
        # tile; its contribution is zeroed by the in-kernel row mask.
        return (jnp.minimum(blk, tiles_total - 1), 0)

    kernel = functools.partial(
        _kld_rows_kernel,
        n_rows=N, rows_per_tile=tr, tiles_per_core=tiles_per_core)

    partials = pl.pallas_call(
        kernel,
        out_shape=jax.ShapeDtypeStruct((num_cores, 1, 1), jnp.float32),
        grid=(num_cores, tiles_per_core),
        in_specs=[
            pl.BlockSpec((tr, D), row_map),
            pl.BlockSpec((tr, D), row_map),
        ],
        out_specs=pl.BlockSpec((1, 1, 1), lambda c, t: (c, 0, 0)),
        scratch_shapes=[pltpu.VMEM((1, 1), jnp.float32)],
        compiler_params=pltpu.CompilerParams(
            dimension_semantics=("parallel", "arbitrary")),
    )(x1, x2)

    total = jnp.sum(partials)                      # == sum_b kl_b
    if reduction == "mean":
        total = total / jnp.float32(B)
    return total


def _reference(m1, m2, reduction="mean"):
    """Pure-JAX f32 reference mirroring the torch module (prod-based det)."""
    mean1 = m1.mean(-1)
    mean2 = m2.mean(-1)
    var1 = m1.var(-1, ddof=1)
    var2 = m2.var(-1, ddof=1)
    var_avg = (var1 + var2) / 2
    mean_avg = (mean1 + mean2) / 2
    inv_avg = 1.0 / mean_avg
    det_avg = jnp.prod(mean_avg, axis=-1)
    det_1 = jnp.prod(mean1, axis=-1)
    det_2 = jnp.prod(mean2, axis=-1)
    L = m1.shape[1]
    t11 = jnp.log(det_avg / det_1)
    t12 = jnp.log(det_avg / det_2)
    t21 = jnp.sum(mean1 * inv_avg, -1)
    t22 = jnp.sum(mean2 * inv_avg, -1)
    t31 = jnp.sum((var_avg - var1) ** 2 * inv_avg, -1)
    t32 = jnp.sum((var_avg - var2) ** 2 * inv_avg, -1)
    kl = 0.5 * (0.5 * (t11 - L + t21 + t31) + 0.5 * (t12 - L + t22 + t32))
    return jnp.mean(kl) if reduction == "mean" else jnp.sum(kl)


if __name__ == "__main__":
    key = jax.random.PRNGKey(0)

    # Primary small case (bs, len, d) — keep per-position means positive so
    # log/inverse stay finite, exactly as the torch module requires.
    k1, k2, k3, k4 = jax.random.split(key, 4)
    B, L, D = 2, 8, 32
    m1 = jax.random.uniform(k1, (B, L, D), jnp.float32, minval=0.5, maxval=1.5)
    m2 = jax.random.uniform(k2, (B, L, D), jnp.float32, minval=0.5, maxval=1.5)

    out_mean = jax.block_until_ready(multivariate_kld1(m1, m2, "mean"))
    out_sum = jax.block_until_ready(multivariate_kld1(m1, m2, "sum"))
    ref_mean = _reference(m1, m2, "mean")
    ref_sum = _reference(m1, m2, "sum")
    assert bool(jnp.isfinite(out_mean)), ("non-finite kernel output", out_mean)
    assert bool(jnp.allclose(out_mean, ref_mean, rtol=1e-3, atol=1e-4)), (out_mean, ref_mean)
    assert bool(jnp.allclose(out_sum, ref_sum, rtol=1e-3, atol=1e-4)), (out_sum, ref_sum)

    # Secondary case exercising the multi-tile / two-partial / masked-tail
    # path (looser tolerance: the f32 prod-based reference itself loses
    # precision at this L).
    B2, L2, D2 = 5, 500, 40
    n1 = jax.random.uniform(k3, (B2, L2, D2), jnp.float32, minval=0.5, maxval=1.5)
    n2 = jax.random.uniform(k4, (B2, L2, D2), jnp.float32, minval=0.5, maxval=1.5)
    out2 = jax.block_until_ready(multivariate_kld1(n1, n2, "mean"))
    ref2 = _reference(n1, n2, "mean")
    assert bool(jnp.isfinite(out2)), ("non-finite kernel output", out2)
    assert bool(jnp.allclose(out2, ref2, rtol=1e-2, atol=1e-3)), (out2, ref2)

    print("KERNEL_OK")
</pallas_src>

<mosaic_0001>
module attributes {stable_mosaic.version = 11 : i64} {
  func.func @_kld_rows_kernel(%arg0: i32, %arg1: i32, %arg2: memref<16x32xf32, #tpu.memory_space<vmem>>, %arg3: memref<16x32xf32, #tpu.memory_space<vmem>>, %arg4: memref<1x1x1xf32, #tpu.memory_space<vmem>>, %arg5: memref<1x1xf32, #tpu.memory_space<vmem>>) attributes {dimension_semantics = [#tpu.dimension_semantics<parallel>, #tpu.dimension_semantics<arbitrary>], iteration_bounds = array<i64: 1, 1>, scalar_prefetch = 0 : i64, scratch_operands = 1 : i64, tpu.core_type = #tpu.core_type<tc>, window_params = [{transform_indices = @transform_0, window_bounds = array<i64: 16, 32>}, {transform_indices = @transform_1, window_bounds = array<i64: 16, 32>}, {transform_indices = @transform_2, window_bounds = array<i64: 1, 1, 1>}]} {
    %c0_i32 = arith.constant 0 : i32
    %0 = arith.cmpi eq, %arg1, %c0_i32 : i32
    %1 = arith.extui %0 : i1 to i32
    %c0_i32_0 = arith.constant 0 : i32
    %2 = arith.cmpi ne, %1, %c0_i32_0 : i32
    scf.if %2 {
      %cst_26 = arith.constant 0.000000e+00 : f32
      %75 = vector.broadcast %cst_26 : f32 to vector<1x1xf32>
      %c0_27 = arith.constant 0 : index
      %c0_28 = arith.constant 0 : index
      %76 = vector.load %arg5[%c0_27, %c0_28] : memref<1x1xf32, #tpu.memory_space<vmem>>, vector<1x1xf32>
      tpu.vector_store %arg5[%c0_27, %c0_28], %75 {strides = array<i32>} : memref<1x1xf32, #tpu.memory_space<vmem>>, vector<1x1xf32>,
    } else {
    }
    %c0 = arith.constant 0 : index
    %c0_1 = arith.constant 0 : index
    %3 = vector.load %arg2[%c0, %c0_1] : memref<16x32xf32, #tpu.memory_space<vmem>>, vector<16x32xf32>
    %c0_2 = arith.constant 0 : index
    %c0_3 = arith.constant 0 : index
    %4 = vector.load %arg3[%c0_2, %c0_3] : memref<16x32xf32, #tpu.memory_space<vmem>>, vector<16x32xf32>
    %cst = arith.constant dense<0.000000e+00> : vector<16xf32>
    %5 = vector.multi_reduction <add>, %3, %cst [1] : vector<16x32xf32> to vector<16xf32>
    %6 = vector.shape_cast %5 : vector<16xf32> to vector<16x1xf32>
    %7 = arith.mulf %3, %3 : vector<16x32xf32>
    %cst_4 = arith.constant dense<0.000000e+00> : vector<16xf32>
    %8 = vector.multi_reduction <add>, %7, %cst_4 [1] : vector<16x32xf32> to vector<16xf32>
    %9 = vector.shape_cast %8 : vector<16xf32> to vector<16x1xf32>
    %cst_5 = arith.constant dense<0.000000e+00> : vector<16xf32>
    %10 = vector.multi_reduction <add>, %4, %cst_5 [1] : vector<16x32xf32> to vector<16xf32>
    %11 = vector.shape_cast %10 : vector<16xf32> to vector<16x1xf32>
    %12 = arith.mulf %4, %4 : vector<16x32xf32>
    %cst_6 = arith.constant dense<0.000000e+00> : vector<16xf32>
    %13 = vector.multi_reduction <add>, %12, %cst_6 [1] : vector<16x32xf32> to vector<16xf32>
    %14 = vector.shape_cast %13 : vector<16xf32> to vector<16x1xf32>
    %cst_7 = arith.constant 3.125000e-02 : f32
    %15 = vector.broadcast %cst_7 : f32 to vector<16x1xf32>
    %16 = arith.mulf %6, %15 : vector<16x1xf32>
    %cst_8 = arith.constant 3.125000e-02 : f32
    %17 = vector.broadcast %cst_8 : f32 to vector<16x1xf32>
    %18 = arith.mulf %11, %17 : vector<16x1xf32>
    %19 = arith.mulf %6, %16 : vector<16x1xf32>
    %20 = arith.subf %9, %19 : vector<16x1xf32>
    %cst_9 = arith.constant 3.100000e+01 : f32
    %21 = vector.broadcast %cst_9 : f32 to vector<16x1xf32>
    %22 = arith.divf %20, %21 : vector<16x1xf32>
    %23 = arith.mulf %11, %18 : vector<16x1xf32>
    %24 = arith.subf %14, %23 : vector<16x1xf32>
    %cst_10 = arith.constant 3.100000e+01 : f32
    %25 = vector.broadcast %cst_10 : f32 to vector<16x1xf32>
    %26 = arith.divf %24, %25 : vector<16x1xf32>
    %27 = arith.addf %16, %18 : vector<16x1xf32>
    %cst_11 = arith.constant 5.000000e-01 : f32
    %28 = vector.broadcast %cst_11 : f32 to vector<16x1xf32>
    %29 = arith.mulf %28, %27 : vector<16x1xf32>
    %30 = arith.addf %22, %26 : vector<16x1xf32>
    %cst_12 = arith.constant 5.000000e-01 : f32
    %31 = vector.broadcast %cst_12 : f32 to vector<16x1xf32>
    %32 = arith.mulf %31, %30 : vector<16x1xf32>
    %cst_13 = arith.constant 1.000000e+00 : f32
    %33 = vector.broadcast %cst_13 : f32 to vector<16x1xf32>
    %34 = arith.divf %33, %29 : vector<16x1xf32>
    %35 = math.log %29 : vector<16x1xf32>
    %cst_14 = arith.constant 2.000000e+00 : f32
    %36 = vector.broadcast %cst_14 : f32 to vector<16x1xf32>
    %37 = arith.mulf %36, %35 : vector<16x1xf32>
    %38 = math.log %16 : vector<16x1xf32>
    %39 = arith.subf %37, %38 : vector<16x1xf32>
    %40 = math.log %18 : vector<16x1xf32>
    %41 = arith.subf %39, %40 : vector<16x1xf32>
    %42 = arith.mulf %16, %34 : vector<16x1xf32>
    %43 = arith.mulf %18, %34 : vector<16x1xf32>
    %44 = arith.addf %42, %43 : vector<16x1xf32>
    %45 = arith.subf %32, %22 : vector<16x1xf32>
    %46 = arith.subf %32, %26 : vector<16x1xf32>
    %47 = arith.mulf %45, %45 : vector<16x1xf32>
    %48 = arith.mulf %46, %46 : vector<16x1xf32>
    %49 = arith.addf %47, %48 : vector<16x1xf32>
    %50 = arith.mulf %49, %34 : vector<16x1xf32>
    %51 = arith.addf %41, %44 : vector<16x1xf32>
    %52 = arith.addf %51, %50 : vector<16x1xf32>
    %cst_15 = arith.constant 2.000000e+00 : f32
    %53 = vector.broadcast %cst_15 : f32 to vector<16x1xf32>
    %54 = arith.subf %52, %53 : vector<16x1xf32>
    %cst_16 = arith.constant 2.500000e-01 : f32
    %55 = vector.broadcast %cst_16 : f32 to vector<16x1xf32>
    %56 = arith.mulf %55, %54 : vector<16x1xf32>
    %c1_i32 = arith.constant 1 : i32
    %57 = arith.muli %arg0, %c1_i32 : i32
    %58 = arith.addi %57, %arg1 : i32
    %c16_i32 = arith.constant 16 : i32
    %59 = arith.muli %58, %c16_i32 : i32
    %60 = tpu.iota {dimensions = array<i32: 0>} : vector<16x1xi32>
    %61 = vector.broadcast %59 : i32 to vector<16x1xi32>
    %62 = arith.addi %61, %60 : vector<16x1xi32>
    %c16_i32_17 = arith.constant 16 : i32
    %63 = vector.broadcast %c16_i32_17 : i32 to vector<16x1xi32>
    %64 = arith.cmpi slt, %62, %63 : vector<16x1xi32>
    %cst_18 = arith.constant 0.000000e+00 : f32
    %65 = vector.broadcast %cst_18 : f32 to vector<16x1xf32>
    %66 = arith.select %64, %56, %65 : vector<16x1xi1>, vector<16x1xf32>
    %c0_19 = arith.constant 0 : index
    %c0_20 = arith.constant 0 : index
    %67 = vector.load %arg5[%c0_19, %c0_20] : memref<1x1xf32, #tpu.memory_space<vmem>>, vector<1x1xf32>
    %cst_21 = arith.constant dense<0.000000e+00> : vector<1xf32>
    %68 = vector.multi_reduction <add>, %66, %cst_21 [0] : vector<16x1xf32> to vector<1xf32>
    %69 = vector.shape_cast %68 : vector<1xf32> to vector<1x1xf32>
    %70 = arith.addf %67, %69 : vector<1x1xf32>
    %c0_22 = arith.constant 0 : index
    %c0_23 = arith.constant 0 : index
    %71 = vector.load %arg5[%c0_22, %c0_23] : memref<1x1xf32, #tpu.memory_space<vmem>>, vector<1x1xf32>
    tpu.vector_store %arg5[%c0_22, %c0_23], %70 {strides = array<i32>} : memref<1x1xf32, #tpu.memory_space<vmem>>, vector<1x1xf32>,
    %c0_i32_24 = arith.constant 0 : i32
    %72 = arith.cmpi eq, %arg1, %c0_i32_24 : i32
    %73 = arith.extui %72 : i1 to i32
    %c0_i32_25 = arith.constant 0 : i32
    %74 = arith.cmpi ne, %73, %c0_i32_25 : i32
    scf.if %74 {
      %c0_26 = arith.constant 0 : index
      %c0_27 = arith.constant 0 : index
      %75 = vector.load %arg5[%c0_26, %c0_27] : memref<1x1xf32, #tpu.memory_space<vmem>>, vector<1x1xf32>
      %76 = vector.shape_cast %75 : vector<1x1xf32> to vector<1x1x1xf32>
      %c0_28 = arith.constant 0 : index
      %c0_29 = arith.constant 0 : index
      %c0_30 = arith.constant 0 : index
      %77 = vector.load %arg4[%c0_28, %c0_29, %c0_30] : memref<1x1x1xf32, #tpu.memory_space<vmem>>, vector<1x1x1xf32>
      tpu.vector_store %arg4[%c0_28, %c0_29, %c0_30], %76 {strides = array<i32>} : memref<1x1x1xf32, #tpu.memory_space<vmem>>, vector<1x1x1xf32>,
    } else {
    }
    return
  }
  func.func @transform_0(%arg0: i32, %arg1: i32) -> (i32, i32) {
    %c1_i32 = arith.constant 1 : i32
    %0 = arith.muli %arg0, %c1_i32 : i32
    %1 = arith.addi %0, %arg1 : i32
    %c0_i32 = arith.constant 0 : i32
    %2 = arith.minsi %1, %c0_i32 : i32
    %c0_i32_0 = arith.constant 0 : i32
    %c0_i32_1 = arith.constant 0 : i32
    return %2, %c0_i32_0 : i32, i32
  }
  func.func @transform_1(%arg0: i32, %arg1: i32) -> (i32, i32) {
    %c1_i32 = arith.constant 1 : i32
    %0 = arith.muli %arg0, %c1_i32 : i32
    %1 = arith.addi %0, %arg1 : i32
    %c0_i32 = arith.constant 0 : i32
    %2 = arith.minsi %1, %c0_i32 : i32
    %c0_i32_0 = arith.constant 0 : i32
    %c0_i32_1 = arith.constant 0 : i32
    return %2, %c0_i32_0 : i32, i32
  }
  func.func @transform_2(%arg0: i32, %arg1: i32) -> (i32, i32, i32) {
    %c0_i32 = arith.constant 0 : i32
    %c0_i32_0 = arith.constant 0 : i32
    %c0_i32_1 = arith.constant 0 : i32
    return %arg0, %c0_i32, %c0_i32_0 : i32, i32, i32
  }
}

</mosaic_0001>

<bundles_post_ra>
// kernel: tpu_custom_call.1
= control target key start
LH: loop header
LB: loop body
LE: loop exit
PB: predicated region body
PF: predicated region fallthrough
CT: control target
= control target key end

     0   :  { %7 = vsyncpa [#allocation4], 0  ;;  %s438_s0 = inlined_call_operand.hbm [shape: f32[16,32], index: 0, kind: input, shape index: {}]   ;;  %s439_s1 = inlined_call_operand.hbm [shape: f32[16,32], index: 1, kind: input, shape index: {}]   ;;  %s440_s2 = inlined_call_operand.hbm [shape: f32[1,1,1], index: 2, kind: output, shape index: {}]  }
   0x1   :  { %8 = vsyncpa [#allocation7], 0 }
   0x2   :  { %9 = vsyncpa [#allocation5], 0  ;;  %s20_s11 = sshll.u32 %s438_s0, 4  ;;  %s363_s12 = smov [#allocation3]   ;;  %s21_s11 = int_to_ptr.hbm [resolvable:$true] %s20_s11 }
   0x3   :  { %s22_s13 = sshll.u32 %s363_s12, 4  ;;  %s39_s16 = sshll.u32 %s439_s1, 4  ;;  %s23_s13 = int_to_ptr.vmem [resolvable:$true] %s22_s13  ;;  %s40_s16 = int_to_ptr.hbm [resolvable:$true] %s39_s16 }
   0x4   :  { %s364_s17 = smov 128   ;;  %s365_s18 = smov 8  }
   0x5   :  { %28 = dma.hbm_to_vmem [thread:$0]  %s21_s11, 256, %s23_s13, [#allocation4], %s364_s17, %s364_s17, %s365_s18  }
   0x6   :  { %s366_s19 = smov [#allocation6]  }
   0x7   :  { %s41_s20 = sshll.u32 %s366_s19, 4  ;;  %s42_s20 = int_to_ptr.vmem [resolvable:$true] %s41_s20 }
   0x8   :  { %47 = dma.hbm_to_vmem [thread:$0]  %s40_s16, 256, %s42_s20, [#allocation7], %s364_s17, %s364_s17, %s365_s18  }
   0x9   :  { %357 = dma.done.wait [#allocation4], 256  }
   0xa   :  { %358 = vsyncadd [#allocation4], 4294967040 }
   0xb   :  { %359 = dma.done.wait [#allocation7], 256  }
   0xc   :  { %360 = vsyncadd [#allocation7], 4294967040  ;;  %vm74_vm0 = vcmask 261120   ;;  %v72_v0 = vld [vmem:[#allocation6] sm:$0xff]  ;;  %v70_v1 = vld [vmem:[#allocation3] sm:$0xff]  ;;  %v367_v16 = vmov 31.0  }
   0xd   :  { %v89_v2 = vsel %vm74_vm0, %v72_v0, 0.0  ;;  %v75_v3 = vsel %vm74_vm0, %v70_v1, 0.0  ;;  %v81_v4 = vmul.f32 %v70_v1, %v70_v1  ;;  %v73_v6 = vld [vmem:[#allocation6 + $0x8] sm:$0xff]  ;;  %v71_v7 = vld [vmem:[#allocation3 + $0x8] sm:$0xff]  ;;  %v95_v12 = vmul.f32 %v72_v0, %v72_v0  ;;  %s369_s0 = smov [#allocation8]   ;;  %s243_s23 = sshll.u32 %s440_s2, 4  ;;  %s244_s23 = int_to_ptr.hbm [resolvable:$true] %s243_s23 }
   0xe   :  { %90 = vadd.xlane.f32.xlu1 %v89_v2  ;;  %76 = vadd.xlane.f32.xlu0 %v75_v3  ;;  %v82_v8 = vmul.f32 %v71_v7, %v71_v7  ;;  %v92_v9 = vsel %vm74_vm0, %v73_v6, 0.0  ;;  %v78_v10 = vsel %vm74_vm0, %v71_v7, 0.0  ;;  %v96_v13 = vmul.f32 %v73_v6, %v73_v6  ;;  %s241_s1 = sshll.u32 %s369_s0, 4  ;;  %s242_s1 = int_to_ptr.vmem [resolvable:$true] %s241_s1 }
   0xf   :  { %v83_v5 = vsel %vm74_vm0, %v81_v4, 0.0  ;;  %v97_v15 = vsel %vm74_vm0, %v95_v12, 0.0  ;;  %267 = vrcp.f32 %v367_v16  ;;  %vm68_vm4 = vcmask 0  }
  0x10   :  { %84 = vadd.xlane.f32.xlu2 %v83_v5  ;;  %v86_v11 = vsel %vm74_vm0, %v82_v8, 0.0  ;;  %v100_v14 = vsel %vm74_vm0, %v96_v13, 0.0  ;;  %v368_v0 = vmov 0.0  }
  0x11   :  { %69 = vst.msk [vmem:[#allocation2] sm:$0x1] %vm68_vm4, %v368_v0 }
  0x15   :  { %v268_v17 = vpop.eup %267 }
  0x16   :  { %93 = vadd.xlane.f32.xlu1 %v92_v9  ;;  %79 = vadd.xlane.f32.xlu0 %v78_v10  ;;  %v112_v18 = vmul.f32 31.0, %v268_v17  ;;  %vm116_vm1 = vweird.f32 %v268_v17 }
  0x18   :  { %87 = vadd.xlane.f32.xlu2 %v86_v11  ;;  %v113_v25 = vsub.f32 1.0, %v112_v18 }
  0x1a   :  { %v114_v27 = vmul.f32 %v268_v17, %v113_v25 }
  0x1c   :  { %v115_v33 = vadd.f32 %v268_v17, %v114_v27 }
  0x1e   :  { %101 = vadd.xlane.f32.xlu1 %v100_v14  ;;  %98 = vadd.xlane.f32.xlu0 %v97_v15  ;;  %v117_v41 = vsel %vm116_vm1, %v268_v17, %v115_v33 }
  0x81   :  { %v91_v19 = vpop.xlane.xlu1 %90  ;;  %v77_v20 = vpop.xlane.xlu0 %76 }
  0x82   :  { %v399_v21 = vmul.f32 0.03125, %v91_v19  ;;  %v401_v22 = vmul.f32 0.03125, %v77_v20 }
  0x83   :  { %v85_v23 = vpop.xlane.xlu2 %84 }
  0x84   :  { %v126_v24 = vadd.f32 %v399_v21, %v401_v22  ;;  %v107_v32 = vmul.f32 %v401_v22, %v77_v20  ;;  %v120_v45 = vmul.f32 %v399_v21, %v91_v19 }
  0x86   :  { %v128_v26 = vmul.f32 0.5, %v126_v24  ;;  %v109_v39 = vsub.f32 %v85_v23, %v107_v32 }
  0x88   :  { %269 = vrcp.f32 %v128_v26  ;;  %vm139_vm2 = vweird.f32 %v128_v26  ;;  %v143_v49 = vand.u32 2147483647, %v128_v26  ;;  %v145_v50 = vand.u32 2147483648, %v128_v26 }
  0x89   :  { %v94_v28 = vpop.xlane.xlu1 %93  ;;  %v80_v29 = vpop.xlane.xlu0 %79  ;;  %271 = vlog2.f32 %v128_v26  ;;  %v118_v53 = vmul.f32 %v117_v41, %v109_v39 }
  0x8a   :  { %v405_v30 = vmul.f32 0.03125, %v94_v28  ;;  %v407_v31 = vmul.f32 0.03125, %v80_v29  ;;  %273 = vlog2.f32 %v399_v21  ;;  %vm144_vm6 = vcmp.eq.f32.partialorder %v143_v49, 8.507059e+37 }
  0x8b   :  { %v88_v36 = vpop.xlane.xlu2 %87  ;;  %275 = vlog2.f32 %v401_v22  ;;  %v146_v62 = vor.u32 1.1754944e-38, %v145_v50 }
  0x8c   :  { %v108_v34 = vmul.f32 %v407_v31, %v80_v29  ;;  %v127_v35 = vadd.f32 %v405_v30, %v407_v31  ;;  %v121_v42 = vmul.f32 %v405_v30, %v94_v28 }
  0x8e   :  { %v270_v37 = vpop.eup %269  ;;  %v414_v40 = vmul.f32 0.5, %v127_v35  ;;  %v110_v43 = vsub.f32 %v88_v36, %v108_v34 }
  0x8f   :  { %v135_v38 = vmul.f32 %v270_v37, %v128_v26  ;;  %v272_v44 = vpop.eup %271  ;;  %vm140_vm3 = vweird.f32 %v270_v37 }
  0x90   :  { %277 = vrcp.f32 %v414_v40  ;;  %v274_v55 = vpop.eup %273  ;;  %v165_v56 = vmul.f32 0.6931472, %v272_v44  ;;  %v119_v57 = vmul.f32 %v117_v41, %v110_v43  ;;  %vm141_vm5 = vmor %vm139_vm2, %vm140_vm3  ;;  %v158_v19 = vand.u32 2147483647, %v414_v40 }
  0x91   :  { %v136_v46 = vsub.f32 1.0, %v135_v38  ;;  %v102_v47 = vpop.xlane.xlu1 %101  ;;  %v99_v48 = vpop.xlane.xlu0 %98  ;;  %279 = vlog2.f32 %v414_v40  ;;  %v177_v2 = vmul.f32 0.6931472, %v274_v55  ;;  %v160_v20 = vand.u32 2147483648, %v414_v40 }
  0x92   :  { %v123_v51 = vsub.f32 %v102_v47, %v121_v42  ;;  %v122_v54 = vsub.f32 %v99_v48, %v120_v45  ;;  %281 = vlog2.f32 %v407_v31  ;;  %v276_v61 = vpop.eup %275  ;;  %v168_v7 = vmul.f32 2.0, %v165_v56 }
  0x93   :  { %v137_v52 = vmul.f32 %v270_v37, %v136_v46  ;;  %283 = vlog2.f32 %v405_v30  ;;  %v171_v10 = vmul.f32 0.6931472, %v276_v61  ;;  %vm154_vm8 = vweird.f32 %v414_v40 }
  0x94   :  { %v125_v58 = vmul.f32 %v123_v51, %v117_v41  ;;  %v124_v60 = vmul.f32 %v122_v54, %v117_v41  ;;  %v161_v36 = vor.u32 1.1754944e-38, %v160_v20  ;;  %vm159_vm10 = vcmp.eq.f32.partialorder %v158_v19, 8.507059e+37 }
  0x95   :  { %v138_v59 = vadd.f32 %v270_v37, %v137_v52  ;;  %v174_v25 = vsub.f32 %v168_v7, %v171_v10 }
  0x96   :  { %v131_v63 = vadd.f32 %v125_v58, %v119_v57  ;;  %v278_v1 = vpop.eup %277  ;;  %v130_v4 = vadd.f32 %v124_v60, %v118_v53 }
  0x97   :  { %v142_v3 = vsel %vm141_vm5, %v270_v37, %v138_v59  ;;  %v280_v5 = vpop.eup %279  ;;  %v150_v8 = vmul.f32 %v278_v1, %v414_v40  ;;  %vm155_vm7 = vweird.f32 %v278_v1  ;;  %v180_v41 = vsub.f32 %v174_v25, %v177_v2 }
  0x98   :  { %v147_v6 = vsel %vm144_vm6, %v146_v62, %v142_v3  ;;  %v133_v9 = vmul.f32 0.5, %v131_v63  ;;  %v167_v12 = vmul.f32 0.6931472, %v280_v5  ;;  %v132_v13 = vmul.f32 0.5, %v130_v4  ;;  %v282_v14 = vpop.eup %281  ;;  %vm156_vm9 = vmor %vm154_vm8, %vm155_vm7  ;;  %v220_v63 = vld [vmem:[#allocation2] sm:$0x1] }
  0x99   :  { %v182_v11 = vmul.f32 %v147_v6, %v401_v22  ;;  %v184_v15 = vmul.f32 %v147_v6, %v399_v21  ;;  %v151_v16 = vsub.f32 1.0, %v150_v8  ;;  %v284_v28 = vpop.eup %283  ;;  %v173_v22 = vmul.f32 0.6931472, %v282_v14 }
  0x9a   :  { %v189_v17 = vsub.f32 %v133_v9, %v119_v57  ;;  %v191_v18 = vsub.f32 %v133_v9, %v125_v58  ;;  %v188_v23 = vsub.f32 %v132_v13, %v118_v53  ;;  %v190_v24 = vsub.f32 %v132_v13, %v124_v60 }
  0x9b   :  { %v152_v26 = vmul.f32 %v278_v1, %v151_v16  ;;  %v169_v27 = vmul.f32 2.0, %v167_v12  ;;  %v186_v21 = vadd.f32 %v184_v15, %v182_v11  ;;  %v179_v42 = vmul.f32 0.6931472, %v284_v28 }
  0x9c   :  { %v192_v29 = vmul.f32 %v188_v23, %v188_v23  ;;  %v194_v32 = vmul.f32 %v190_v24, %v190_v24  ;;  %v193_v34 = vmul.f32 %v189_v17, %v189_v17  ;;  %v195_v35 = vmul.f32 %v191_v18, %v191_v18 }
  0x9d   :  { %v153_v33 = vadd.f32 %v278_v1, %v152_v26  ;;  %v175_v39 = vsub.f32 %v169_v27, %v173_v22  ;;  %v200_v47 = vadd.f32 %v186_v21, %v180_v41 }
  0x9e   :  { %v196_v37 = vadd.f32 %v194_v32, %v192_v29  ;;  %v197_v46 = vadd.f32 %v195_v35, %v193_v34 }
  0x9f   :  { %v157_v38 = vsel %vm156_vm9, %v278_v1, %v153_v33  ;;  %v181_v49 = vsub.f32 %v175_v39, %v179_v42 }
  0xa0   :  { %v162_v43 = vsel %vm159_vm10, %v161_v36, %v157_v38  ;;  %v198_v44 = vmul.f32 %v196_v37, %v147_v6 }
  0xa1   :  { %v183_v45 = vmul.f32 %v162_v43, %v407_v31  ;;  %v185_v40 = vmul.f32 %v162_v43, %v405_v30  ;;  %v199_v51 = vmul.f32 %v197_v46, %v162_v43 }
  0xa2   :  { %v202_v50 = vadd.f32 %v200_v47, %v198_v44 }
  0xa3   :  { %v187_v48 = vadd.f32 %v185_v40, %v183_v45 }
  0xa4   :  { %v258_v54 = vadd.f32 -2.0, %v202_v50 }
  0xa5   :  { %v201_v52 = vadd.f32 %v187_v48, %v181_v49 }
  0xa6   :  { %v206_v57 = vmul.f32 0.25, %v258_v54 }
  0xa7   :  { %v203_v53 = vadd.f32 %v201_v52, %v199_v51 }
  0xa9   :  { %v259_v55 = vadd.f32 -2.0, %v203_v53 }
  0xab   :  { %v207_v56 = vmul.f32 0.25, %v259_v55 }
  0xad   :  { %v221_v58 = vadd.f32 %v207_v56, %v206_v57 }
  0xaf   :  { %v222_v59 = vrot.slane %v221_v58, 4 }
  0xb1   :  { %v223_v60 = vadd.f32 %v222_v59, %v221_v58 }
  0xb3   :  { %v224_v61 = vrot.slane %v223_v60, 2 }
  0xb5   :  { %v225_v62 = vadd.f32 %v224_v61, %v223_v60 }
  0xb7   :  { %v226_v31 = vrot.slane %v225_v62, 1 }
  0xb9   :  { %v227_v30 = vadd.f32 %v226_v31, %v225_v62 }
  0xbb   :  { %v228_v0 = vadd.f32 %v227_v30, %v220_v63 }
  0xbd   :  { %230 = vst.msk [vmem:[#allocation2] sm:$0x1] %vm68_vm4, %v228_v0 }
  0xc4   :  { %v234_v1 = vld [vmem:[#allocation2] sm:$0x1] }
  0xc5   :  { %235 = vst.msk [vmem:[#allocation8] sm:$0x1] %vm68_vm4, %v234_v1 }
  0xc6   :  { %246 = dma.vmem_to_hbm [thread:$0]  %s242_s1, 16, %s244_s23, [#allocation5]  }
  0xc7   :  { %361 = dma.done.wait [#allocation5], 16  }
  0xc8   :  { %362 = vsyncadd [#allocation5], 4294967280 }
  0xc9   :  { %251 = vsyncpa [#allocation4], 1 }
  0xca   :  { %252 = vsyncpa [#allocation7], 1 }
  0xcb   :  { %253 = vsyncpa [#allocation5], 1 }

</bundles_post_ra>
